<compile_context>
chip_gen: v7x
topology: tpu7x:2x2x1
jax: 0.10.0
libtpu: 0.0.40
codegen_flags: <defaults>
</compile_context>

<pallas_src>
import functools

import jax
import jax.numpy as jnp
from jax import lax
from jax.experimental import pallas as pl
from jax.experimental.pallas import tpu as pltpu

ALPHA = 1.0
GAMMA = 2.0
LANE = 128


def _cdiv(a, b):
    return -(-a // b)


def _round_up(x, m):
    return _cdiv(x, m) * m


def _sublane_multiple(dtype):
    return {4: 8, 2: 16, 1: 32}.get(jnp.dtype(dtype).itemsize, 8)


def _num_tensorcores():
    # Dual-TensorCore parts (v7x) benefit from a CORE_PARALLEL split of the
    # reduction; single-TC chips (v5e/v6e) should not pay for it.
    try:
        kind = jax.devices()[0].device_kind.lower()
    except Exception:
        return 1
    return 2 if ("v7" in kind or "7x" in kind) else 1


def _focal_pow(base, gamma):
    g = float(gamma)
    if g == int(g) and g >= 0:
        return lax.integer_pow(base, int(g))  # plain VPU multiplies, no EUP pow
    return jnp.power(base, g)


def _focal_kernel(x_ref, t_ref, o_ref, *, tr, steps, nb, rem, scale, gamma,
                  needs_mask, hard_targets, clamped, tail_c, tail_i):
    c = pl.program_id(0)
    i = pl.program_id(1)

    @pl.when(i == 0)
    def _init():
        o_ref[...] = jnp.zeros_like(o_ref)

    x = x_ref[...].astype(jnp.float32)
    t = t_ref[...].astype(jnp.float32)

    # Numerically-stable BCE-with-logits (PyTorch semantics):
    #   bce = max(x, 0) - x*t + log1p(exp(-|x|))
    e = jnp.exp(-jnp.abs(x))
    bce = jnp.maximum(x, 0.0) - x * t + jnp.log1p(e)
    if hard_targets:
        # pt = exp(-bce) rewritten via e for t in {0,1}: one fewer EUP exp.
        num = jnp.where((x >= 0.0) == (t >= 0.5), 1.0, e)
        pt = num / (1.0 + e)
    else:
        pt = jnp.exp(-bce)
    f_loss = _focal_pow(1.0 - pt, gamma) * bce  # alpha folded into `scale`

    def accumulate(vals):
        # Sublane-group partial reduce into the resident (8, 128) output block;
        # the single cross-lane reduce happens once, in the wrapper.
        o_ref[...] += vals.reshape(tr // 8, 8, LANE).sum(axis=0)

    if needs_mask:
        is_tail = (c == tail_c) & (i == tail_i)
        full_cond = jnp.logical_not(is_tail)
        if clamped:
            full_cond = full_cond & ((c * steps + i) < nb)

        @pl.when(full_cond)
        def _full():
            accumulate(f_loss)

        @pl.when(is_tail)
        def _tail():
            # Intra-block flat index vs. static remainder: masks both the tiny
            # zero-pad (focal loss at x=0,t=0 is nonzero) and any garbage in
            # the partial-block out-of-bounds region.  Max value tr*128, so no
            # int32 overflow regardless of total element count.
            idx = (lax.broadcasted_iota(jnp.int32, (tr, LANE), 0) * LANE
                   + lax.broadcasted_iota(jnp.int32, (tr, LANE), 1))
            accumulate(jnp.where(idx < rem, f_loss, 0.0))
    else:
        if clamped:
            @pl.when((c * steps + i) < nb)
            def _full():
                accumulate(f_loss)
        else:
            accumulate(f_loss)

    @pl.when(i == steps - 1)
    def _fini():
        o_ref[...] = o_ref[...] * scale


def focal_loss(inputs, targets, alpha=ALPHA, gamma=GAMMA, row_tile=2048,
               hard_targets=False):
    """inputs/targets: any matching shape (e.g. NCHW logits). Scalar mean focal loss.

    Pass bf16 inputs straight through if the producer emits them (the kernel
    upcasts per tile); do not up/down-cast in the caller.
    """
    assert inputs.shape == targets.shape
    total_n = int(inputs.size)
    assert total_n > 0

    sub = max(_sublane_multiple(inputs.dtype), _sublane_multiple(targets.dtype))
    rows = _cdiv(total_n, LANE)
    padded_n = rows * LANE                      # pads at most 127 elements
    ragged = padded_n != total_n

    def to_slab(a):
        flat = a.reshape(-1)
        if ragged:
            flat = jnp.pad(flat, (0, padded_n - total_n))
        return flat.reshape(rows, LANE)

    x2d = to_slab(inputs)
    t2d = to_slab(targets)

    tr = max(sub, min(_round_up(row_tile, sub), _round_up(rows, sub)))
    nb = _cdiv(rows, tr)                        # real row-blocks
    splits = max(1, min(_num_tensorcores(), nb))
    steps = _cdiv(nb, splits)                   # row-blocks per core
    clamped = splits * steps != nb              # last core gets dummy block(s)
    needs_mask = total_n % (tr * LANE) != 0     # tail block has invalid elems
    tail_c, tail_i = divmod(nb - 1, steps)
    rem = total_n - (nb - 1) * tr * LANE        # valid elements in tail block

    def in_index(c, i):
        b = c * steps + i
        if clamped:
            b = jnp.minimum(b, nb - 1)          # dummy blocks re-read a valid one
        return (b, 0)

    kernel = functools.partial(
        _focal_kernel,
        tr=tr, steps=steps, nb=nb, rem=rem,
        scale=float(alpha) / float(total_n), gamma=float(gamma),
        needs_mask=needs_mask, hard_targets=hard_targets,
        clamped=clamped, tail_c=tail_c, tail_i=tail_i)

    semantics = (pltpu.CORE_PARALLEL if splits > 1 else pltpu.ARBITRARY,
                 pltpu.ARBITRARY)

    cost = pl.CostEstimate(
        flops=12 * total_n,
        transcendentals=(2 if hard_targets else 3) * total_n,
        bytes_accessed=int(x2d.nbytes) + int(t2d.nbytes) + splits * 8 * LANE * 4)

    partials = pl.pallas_call(
        kernel,
        out_shape=jax.ShapeDtypeStruct((splits, 8, LANE), jnp.float32),
        grid=(splits, steps),
        in_specs=[pl.BlockSpec((tr, LANE), in_index),
                  pl.BlockSpec((tr, LANE), in_index)],
        out_specs=pl.BlockSpec((None, 8, LANE), lambda c, i: (c, 0, 0)),
        compiler_params=pltpu.CompilerParams(
            dimension_semantics=semantics,
            # Let XLA fuse the tiny (<=127-element) pad copy into the call.
            allow_input_fusion=[True, True] if ragged else None),
        cost_estimate=cost,
    )(x2d, t2d)

    return jnp.sum(partials)


def _focal_loss_ref(inputs, targets, alpha=ALPHA, gamma=GAMMA):
    x = inputs.astype(jnp.float32)
    t = targets.astype(jnp.float32)
    bce = jnp.maximum(x, 0.0) - x * t + jnp.log1p(jnp.exp(-jnp.abs(x)))
    pt = jnp.exp(-bce)
    return jnp.mean(alpha * (1.0 - pt) ** gamma * bce)


if __name__ == "__main__":
    key = jax.random.PRNGKey(0)
    k1, k2, k3, k4 = jax.random.split(key, 4)

    # Small NCHW-shaped logits / targets (segmentation-style use).
    B, C, H, W = 2, 4, 16, 16
    inputs = jax.random.normal(k1, (B, C, H, W), dtype=jnp.float32)
    targets = (jax.random.uniform(k2, (B, C, H, W)) > 0.5).astype(jnp.float32)
    ref = _focal_loss_ref(inputs, targets)

    # 1) aligned shape (no pad at all), single block.
    loss = jax.block_until_ready(focal_loss(inputs, targets))
    assert jnp.allclose(loss, ref, rtol=1e-5, atol=1e-5), (loss, ref)

    # 2) multi-step accumulation path.
    loss_ms = jax.block_until_ready(focal_loss(inputs, targets, row_tile=8))
    assert jnp.allclose(loss_ms, ref, rtol=1e-5, atol=1e-5), (loss_ms, ref)

    # 3) reduced-transcendental path for hard {0,1} targets.
    loss_h = jax.block_until_ready(focal_loss(inputs, targets, hard_targets=True))
    assert jnp.allclose(loss_h, ref, rtol=1e-5, atol=1e-5), (loss_h, ref)

    # 4) ragged shape (not a multiple of 128) -> tiny pad + masked tail tile.
    inputs2 = jax.random.normal(k3, (2, 3, 15, 17), dtype=jnp.float32)
    targets2 = (jax.random.uniform(k4, (2, 3, 15, 17)) > 0.5).astype(jnp.float32)
    ref2 = _focal_loss_ref(inputs2, targets2)
    loss2 = jax.block_until_ready(focal_loss(inputs2, targets2))
    assert jnp.allclose(loss2, ref2, rtol=1e-5, atol=1e-5), (loss2, ref2)

    # 5) ragged + multi-step (tail tile is not the first block).
    loss2_ms = jax.block_until_ready(focal_loss(inputs2, targets2, row_tile=8))
    assert jnp.allclose(loss2_ms, ref2, rtol=1e-5, atol=1e-5), (loss2_ms, ref2)

    print("KERNEL_OK")
</pallas_src>

<mosaic_0001>
module attributes {stable_mosaic.version = 11 : i64} {
  func.func @_focal_kernel(%arg0: i32, %arg1: i32, %arg2: memref<16x128xf32, #tpu.memory_space<vmem>>, %arg3: memref<16x128xf32, #tpu.memory_space<vmem>>, %arg4: memref<1x8x128xf32, #tpu.memory_space<vmem>>) attributes {dimension_semantics = [#tpu.dimension_semantics<arbitrary>, #tpu.dimension_semantics<arbitrary>], iteration_bounds = array<i64: 1, 1>, scalar_prefetch = 0 : i64, scratch_operands = 0 : i64, tpu.core_type = #tpu.core_type<tc>, window_params = [{transform_indices = @transform_0, window_bounds = array<i64: 16, 128>}, {transform_indices = @transform_1, window_bounds = array<i64: 16, 128>}, {transform_indices = @transform_2, window_bounds = array<i64: 1, 8, 128>}]} {
    %c0_i32 = arith.constant 0 : i32
    %0 = arith.cmpi eq, %arg1, %c0_i32 : i32
    %1 = arith.extui %0 : i1 to i32
    %c0_i32_0 = arith.constant 0 : i32
    %2 = arith.cmpi ne, %1, %c0_i32_0 : i32
    scf.if %2 {
      %cst_16 = arith.constant 0.000000e+00 : f32
      %33 = vector.broadcast %cst_16 : f32 to vector<8x128xf32>
      %c0_17 = arith.constant 0 : index
      %c0_18 = arith.constant 0 : index
      %c0_19 = arith.constant 0 : index
      %34 = vector.load %arg4[%c0_17, %c0_18, %c0_19] : memref<1x8x128xf32, #tpu.memory_space<vmem>>, vector<1x8x128xf32>
      %35 = vector.shape_cast %34 : vector<1x8x128xf32> to vector<8x128xf32>
      %36 = vector.shape_cast %33 : vector<8x128xf32> to vector<1x8x128xf32>
      tpu.vector_store %arg4[%c0_17, %c0_18, %c0_19], %36 {strides = array<i32>} : memref<1x8x128xf32, #tpu.memory_space<vmem>>, vector<1x8x128xf32>,
    } else {
    }
    %c0 = arith.constant 0 : index
    %c0_1 = arith.constant 0 : index
    %3 = vector.load %arg2[%c0, %c0_1] : memref<16x128xf32, #tpu.memory_space<vmem>>, vector<16x128xf32>
    %c0_2 = arith.constant 0 : index
    %c0_3 = arith.constant 0 : index
    %4 = vector.load %arg3[%c0_2, %c0_3] : memref<16x128xf32, #tpu.memory_space<vmem>>, vector<16x128xf32>
    %5 = math.absf %3 : vector<16x128xf32>
    %cst = arith.constant 0.000000e+00 : f32
    %6 = vector.broadcast %cst : f32 to vector<16x128xf32>
    %7 = arith.subf %6, %5 : vector<16x128xf32>
    %8 = math.exp %7 : vector<16x128xf32>
    %cst_4 = arith.constant 0.000000e+00 : f32
    %9 = vector.broadcast %cst_4 : f32 to vector<16x128xf32>
    %10 = arith.maximumf %3, %9 : vector<16x128xf32>
    %11 = arith.mulf %3, %4 : vector<16x128xf32>
    %12 = arith.subf %10, %11 : vector<16x128xf32>
    %13 = math.log1p %8 : vector<16x128xf32>
    %14 = arith.addf %12, %13 : vector<16x128xf32>
    %cst_5 = arith.constant 0.000000e+00 : f32
    %15 = vector.broadcast %cst_5 : f32 to vector<16x128xf32>
    %16 = arith.subf %15, %14 : vector<16x128xf32>
    %17 = math.exp %16 : vector<16x128xf32>
    %cst_6 = arith.constant 1.000000e+00 : f32
    %18 = vector.broadcast %cst_6 : f32 to vector<16x128xf32>
    %19 = arith.subf %18, %17 : vector<16x128xf32>
    %20 = arith.mulf %19, %19 : vector<16x128xf32>
    %21 = arith.mulf %20, %14 : vector<16x128xf32>
    %c0_7 = arith.constant 0 : index
    %c0_8 = arith.constant 0 : index
    %c0_9 = arith.constant 0 : index
    %22 = vector.load %arg4[%c0_7, %c0_8, %c0_9] : memref<1x8x128xf32, #tpu.memory_space<vmem>>, vector<1x8x128xf32>
    %23 = vector.shape_cast %22 : vector<1x8x128xf32> to vector<8x128xf32>
    %24 = vector.shape_cast %21 : vector<16x128xf32> to vector<2x8x128xf32>
    %cst_10 = arith.constant dense<0.000000e+00> : vector<8x128xf32>
    %25 = vector.multi_reduction <add>, %24, %cst_10 [0] : vector<2x8x128xf32> to vector<8x128xf32>
    %26 = arith.addf %23, %25 : vector<8x128xf32>
    %c0_11 = arith.constant 0 : index
    %c0_12 = arith.constant 0 : index
    %c0_13 = arith.constant 0 : index
    %27 = vector.load %arg4[%c0_11, %c0_12, %c0_13] : memref<1x8x128xf32, #tpu.memory_space<vmem>>, vector<1x8x128xf32>
    %28 = vector.shape_cast %27 : vector<1x8x128xf32> to vector<8x128xf32>
    %29 = vector.shape_cast %26 : vector<8x128xf32> to vector<1x8x128xf32>
    tpu.vector_store %arg4[%c0_11, %c0_12, %c0_13], %29 {strides = array<i32>} : memref<1x8x128xf32, #tpu.memory_space<vmem>>, vector<1x8x128xf32>,
    %c0_i32_14 = arith.constant 0 : i32
    %30 = arith.cmpi eq, %arg1, %c0_i32_14 : i32
    %31 = arith.extui %30 : i1 to i32
    %c0_i32_15 = arith.constant 0 : i32
    %32 = arith.cmpi ne, %31, %c0_i32_15 : i32
    scf.if %32 {
      %c0_16 = arith.constant 0 : index
      %c0_17 = arith.constant 0 : index
      %c0_18 = arith.constant 0 : index
      %33 = vector.load %arg4[%c0_16, %c0_17, %c0_18] : memref<1x8x128xf32, #tpu.memory_space<vmem>>, vector<1x8x128xf32>
      %34 = vector.shape_cast %33 : vector<1x8x128xf32> to vector<8x128xf32>
      %cst_19 = arith.constant 4.8828125E-4 : f32
      %35 = vector.broadcast %cst_19 : f32 to vector<8x128xf32>
      %36 = arith.mulf %34, %35 : vector<8x128xf32>
      %c0_20 = arith.constant 0 : index
      %c0_21 = arith.constant 0 : index
      %c0_22 = arith.constant 0 : index
      %37 = vector.load %arg4[%c0_20, %c0_21, %c0_22] : memref<1x8x128xf32, #tpu.memory_space<vmem>>, vector<1x8x128xf32>
      %38 = vector.shape_cast %37 : vector<1x8x128xf32> to vector<8x128xf32>
      %39 = vector.shape_cast %36 : vector<8x128xf32> to vector<1x8x128xf32>
      tpu.vector_store %arg4[%c0_20, %c0_21, %c0_22], %39 {strides = array<i32>} : memref<1x8x128xf32, #tpu.memory_space<vmem>>, vector<1x8x128xf32>,
    } else {
    }
    return
  }
  func.func @transform_0(%arg0: i32, %arg1: i32) -> (i32, i32) {
    %c1_i32 = arith.constant 1 : i32
    %0 = arith.muli %arg0, %c1_i32 : i32
    %1 = arith.addi %0, %arg1 : i32
    %c0_i32 = arith.constant 0 : i32
    %c0_i32_0 = arith.constant 0 : i32
    return %1, %c0_i32 : i32, i32
  }
  func.func @transform_1(%arg0: i32, %arg1: i32) -> (i32, i32) {
    %c1_i32 = arith.constant 1 : i32
    %0 = arith.muli %arg0, %c1_i32 : i32
    %1 = arith.addi %0, %arg1 : i32
    %c0_i32 = arith.constant 0 : i32
    %c0_i32_0 = arith.constant 0 : i32
    return %1, %c0_i32 : i32, i32
  }
  func.func @transform_2(%arg0: i32, %arg1: i32) -> (i32, i32, i32) {
    %c0_i32 = arith.constant 0 : i32
    %c0_i32_0 = arith.constant 0 : i32
    %c0_i32_1 = arith.constant 0 : i32
    return %arg0, %c0_i32, %c0_i32_0 : i32, i32, i32
  }
}

</mosaic_0001>

<bundles_post_ra>
// kernel: tpu_custom_call.1
= control target key start
LH: loop header
LB: loop body
LE: loop exit
PB: predicated region body
PF: predicated region fallthrough
CT: control target
= control target key end

     0   :  { %7 = vsyncpa [#allocation3], 0  ;;  %s279_s0 = inlined_call_operand.hbm [shape: f32[16,128], index: 0, kind: input, shape index: {}]   ;;  %s280_s1 = inlined_call_operand.hbm [shape: f32[16,128], index: 1, kind: input, shape index: {}]   ;;  %s281_s2 = inlined_call_operand.hbm [shape: f32[1,8,128], index: 2, kind: output, shape index: {}]  }
   0x1   :  { %8 = vsyncpa [#allocation6], 0 }
   0x2   :  { %9 = vsyncpa [#allocation4], 0  ;;  %s223_s9 = smov [#allocation2]   ;;  %s151_s13 = scalar_lea.hbm %s279_s0, 256 }
   0x3   :  { %s19_s10 = sshll.u32 %s223_s9, 4  ;;  %p152_p0 = scmp.ne.s32.totalorder %s279_s0, %s151_s13  ;;  %s20_s10 = int_to_ptr.vmem [resolvable:$true] %s19_s10 }
   0x4   :  { %p155_p1 = scmp.lt.u32.totalorder %s151_s13, %s279_s0 }
   0x6   :  { %p157_p2 = pnand %p155_p1, %p152_p0 }
   0x8   :  { %160 = shalt.err (!%p157_p2)
}
   0x9   :  { %s161_s18 = scalar_lea.vmem %s20_s10, 256  ;;  %p166_p4 = scmp.lt.s32.totalorder %s20_s10, %s20_s10 }
   0xa   :  { %p162_p3 = scmp.ne.s32.totalorder %s20_s10, %s161_s18  ;;  %p167_p5 = scmp.lt.s32.totalorder %s161_s18, %s161_s18 }
   0xc   :  { %p168_p6 = por %p167_p5, %p166_p4 }
   0xe   :  { %p169_p7 = pnand %p168_p6, %p162_p3 }
  0x10   :  { %172 = shalt.err (!%p169_p7)
}
  0x11   :  { %s224_s19 = smov 128   ;;  %s225_s20 = smov 8  }
  0x12   :  { %25 = dma.hbm_to_vmem [thread:$0]  %s279_s0, 256, %s20_s10, [#allocation3], %s224_s19, %s224_s19, %s225_s20  }
  0x13   :  { %s226_s23 = smov [#allocation5]   ;;  %s173_s27 = scalar_lea.hbm %s280_s1, 256 }
  0x14   :  { %s35_s24 = sshll.u32 %s226_s23, 4  ;;  %p174_p8 = scmp.ne.s32.totalorder %s280_s1, %s173_s27  ;;  %s36_s24 = int_to_ptr.vmem [resolvable:$true] %s35_s24 }
  0x15   :  { %p177_p9 = scmp.lt.u32.totalorder %s173_s27, %s280_s1 }
  0x17   :  { %p179_p10 = pnand %p177_p9, %p174_p8 }
  0x19   :  { %182 = shalt.err (!%p179_p10)
}
  0x1a   :  { %s183_s4 = scalar_lea.vmem %s36_s24, 256  ;;  %p188_p12 = scmp.lt.s32.totalorder %s36_s24, %s36_s24 }
  0x1b   :  { %p184_p11 = scmp.ne.s32.totalorder %s36_s24, %s183_s4  ;;  %p189_p13 = scmp.lt.s32.totalorder %s183_s4, %s183_s4 }
  0x1d   :  { %p190_p0 = por %p189_p13, %p188_p12 }
  0x1f   :  { %p191_p1 = pnand %p190_p0, %p184_p11 }
  0x21   :  { %194 = shalt.err (!%p191_p1)
}
  0x22   :  { %41 = dma.hbm_to_vmem [thread:$0]  %s280_s1, 256, %s36_s24, [#allocation6], %s224_s19, %s224_s19, %s225_s20  }
  0x23   :  { %217 = dma.done.wait [#allocation3], 256  }
  0x24   :  { %218 = vsyncadd [#allocation3], 4294967040 }
  0x25   :  { %219 = dma.done.wait [#allocation6], 256  }
  0x26   :  { %220 = vsyncadd [#allocation6], 4294967040  ;;  %v57_v0 = vld [vmem:[#allocation2] sm:$0xff]  ;;  %v58_v1 = vld [vmem:[#allocation2 + $0x8] sm:$0xff]  ;;  %s227_s1 = smov [#allocation7]  }
  0x27   :  { %v61_v2 = vand.u32 2147483647, %v57_v0  ;;  %v62_v3 = vand.u32 2147483647, %v58_v1  ;;  %v59_v14 = vld [vmem:[#allocation5] sm:$0xff]  ;;  %v60_v15 = vld [vmem:[#allocation5 + $0x8] sm:$0xff] }
  0x28   :  { %v69_v17 = vmax.f32 %v57_v0, 0.0  ;;  %v71_v18 = vmul.f32 %v59_v14, %v57_v0  ;;  %v70_v21 = vmax.f32 %v58_v1, 0.0  ;;  %v72_v22 = vmul.f32 %v60_v15, %v58_v1  ;;  %s123_s6 = sshll.u32 %s227_s1, 4  ;;  %s124_s6 = int_to_ptr.vmem [resolvable:$true] %s123_s6 }
  0x29   :  { %v63_v4 = vsub.f32 0.0, %v61_v2  ;;  %v64_v5 = vsub.f32 0.0, %v62_v3  ;;  %s195_s7 = scalar_lea.vmem %s124_s6, 128  ;;  %p200_p3 = scmp.lt.s32.totalorder %s124_s6, %s124_s6 }
  0x2a   :  { %v73_v26 = vsub.f32 %v69_v17, %v71_v18  ;;  %v74_v29 = vsub.f32 %v70_v21, %v72_v22  ;;  %p196_p2 = scmp.ne.s32.totalorder %s124_s6, %s195_s7  ;;  %p201_p4 = scmp.lt.s32.totalorder %s195_s7, %s195_s7 }
  0x2b   :  { %v65_v6 = vmul.f32 1.442695, %v63_v4  ;;  %v67_v7 = vmul.f32 1.442695, %v64_v5 }
  0x2c   :  { %p202_p5 = por %p201_p4, %p200_p3 }
  0x2d   :  { %139 = vpow2.f32 %v65_v6 }
  0x2e   :  { %141 = vpow2.f32 %v67_v7  ;;  %p203_p6 = pnand %p202_p5, %p196_p2 }
  0x37   :  { %v140_v8 = vpop.eup %139 }
  0x38   :  { %v142_v9 = vpop.eup %141  ;;  %v75_v10 = vadd.f32 1.0, %v140_v8  ;;  %v78_v12 = vmul.f32 -0.5, %v140_v8  ;;  %v81_v19 = vand.u32 2147483647, %v140_v8 }
  0x39   :  { %v84_v11 = vadd.f32 1.0, %v142_v9  ;;  %v87_v13 = vmul.f32 -0.5, %v142_v9  ;;  %v90_v23 = vand.u32 2147483647, %v142_v9 }
  0x3a   :  { %143 = vlog2.f32 %v75_v10  ;;  %v79_v16 = vadd.f32 1.0, %v78_v12  ;;  %vm82_vm0 = vcmp.lt.f32.partialorder %v81_v19, 0.0004427343 }
  0x3b   :  { %145 = vlog2.f32 %v84_v11  ;;  %v88_v20 = vadd.f32 1.0, %v87_v13  ;;  %vm91_vm1 = vcmp.lt.f32.partialorder %v90_v23, 0.0004427343 }
  0x3c   :  { %v80_v24 = vmul.f32 %v140_v8, %v79_v16 }
  0x3d   :  { %v89_v27 = vmul.f32 %v142_v9, %v88_v20 }
  0x44   :  { %v144_v25 = vpop.eup %143 }
  0x45   :  { %v146_v28 = vpop.eup %145  ;;  %v77_v30 = vmul.f32 0.6931472, %v144_v25 }
  0x46   :  { %v86_v31 = vmul.f32 0.6931472, %v146_v28 }
  0x47   :  { %v83_v32 = vsel %vm82_vm0, %v80_v24, %v77_v30 }
  0x48   :  { %v92_v33 = vsel %vm91_vm1, %v89_v27, %v86_v31  ;;  %v93_v34 = vadd.f32 %v83_v32, %v73_v26 }
  0x49   :  { %v94_v35 = vadd.f32 %v92_v33, %v74_v29 }
  0x4a   :  { %v95_v36 = vsub.f32 0.0, %v93_v34 }
  0x4b   :  { %v96_v37 = vsub.f32 0.0, %v94_v35 }
  0x4c   :  { %v97_v38 = vmul.f32 1.442695, %v95_v36 }
  0x4d   :  { %v99_v39 = vmul.f32 1.442695, %v96_v37 }
  0x4e   :  { %147 = vpow2.f32 %v97_v38 }
  0x4f   :  { %149 = vpow2.f32 %v99_v39 }
  0x58   :  { %v148_v40 = vpop.eup %147 }
  0x59   :  { %v150_v41 = vpop.eup %149  ;;  %v101_v42 = vsub.f32 1.0, %v148_v40 }
  0x5a   :  { %v102_v43 = vsub.f32 1.0, %v150_v41 }
  0x5b   :  { %v103_v44 = vmul.f32 %v101_v42, %v101_v42 }
  0x5c   :  { %v104_v45 = vmul.f32 %v102_v43, %v102_v43 }
  0x5d   :  { %v105_v46 = vmul.f32 %v103_v44, %v93_v34 }
  0x5e   :  { %v106_v47 = vmul.f32 %v104_v45, %v94_v35 }
  0x60   :  { %v108_v48 = vadd.f32 %v106_v47, %v105_v46 }
  0x62   :  { %v115_v49 = vmul.f32 0.00048828125, %v108_v48 }
  0x64   :  { %116 = vst [vmem:[#allocation7] sm:$0xff] %v115_v49 }
  0x65   :  { %206 = shalt.err (!%p203_p6)
}
  0x66   :  { %s207_s10 = scalar_lea.hbm %s281_s2, 128 }
  0x67   :  { %p208_p7 = scmp.ne.s32.totalorder %s281_s2, %s207_s10  ;;  %p211_p8 = scmp.lt.u32.totalorder %s207_s10, %s281_s2 }
  0x69   :  { %p213_p9 = pnand %p211_p8, %p208_p7 }
  0x6b   :  { %216 = shalt.err (!%p213_p9)
}
  0x6c   :  { %126 = dma.vmem_to_hbm [thread:$0]  %s124_s6, 128, %s281_s2, [#allocation4]  }
  0x6d   :  { %221 = dma.done.wait [#allocation4], 128  }
  0x6e   :  { %222 = vsyncadd [#allocation4], 4294967168 }
  0x6f   :  { %130 = vsyncpa [#allocation3], 1 }
  0x70   :  { %131 = vsyncpa [#allocation6], 1 }
  0x71   :  { %132 = vsyncpa [#allocation4], 1 }

</bundles_post_ra>
